<compile_context>
chip_gen: v7x
topology: tpu7x:2x2x1
jax: 0.10.0
libtpu: 0.0.40
codegen_flags: <defaults>
</compile_context>

<pallas_src>
import functools

import jax
import jax.numpy as jnp
from jax import lax
from jax.experimental import pallas as pl
from jax.experimental.pallas import tpu as pltpu

LANE = 128
SUB = 16  # bf16 sublane packing; row padding to this keeps every slice/stack aligned


def _round_up(x, m):
    return ((x + m - 1) // m) * m


def matching_kernel(xs_ref, xq_ref, w_ref, b_ref, sy_ref, out_ref, acc_ref, *, K, Kp):
    """MatchingNetwork forward.  Grid axis 0 is the F (input-feature) reduction.

    xs_ref : [Kp, TF]   support rows, bf16, zero-padded
    xq_ref : [Qp, TF]   query rows, bf16, zero-padded
    w_ref  : [TF, Dp]   encoder weight tile, bf16, zero-padded
    b_ref  : [1, Dp]    encoder bias, f32, zero-padded
    sy_ref : [Kp, 1]    support labels, int32 (padding rows are masked out of softmax)
    out_ref: [Qp, Cp]   softmax-mixed predictions, f32, lane-dense store
    acc_ref: [Kp+Qp, Dp] f32 accumulator scratch (persists across grid steps)
    """
    f = pl.program_id(0)
    nf = pl.num_programs(0)

    @pl.when(f == 0)
    def _init():
        acc_ref[...] = jnp.zeros_like(acc_ref)

    # Fused encoder matmul: support rows stacked on query rows (both sublane-pack
    # aligned) so the weight tile hits the MXU once per step; f32 accumulation.
    x = jnp.concatenate([xs_ref[...], xq_ref[...]], axis=0)          # [Kp+Qp, TF] bf16
    acc_ref[...] += jnp.dot(x, w_ref[...], preferred_element_type=jnp.float32)

    @pl.when(f == nf - 1)
    def _epilogue():
        eps = 1e-8
        z = jnp.maximum(acc_ref[...] + b_ref[...], 0.0)              # bias + ReLU (f32, VPU)
        z_s = z[:Kp, :]                                              # aligned value slices
        z_q = z[Kp:, :]

        # Cosine similarity: rsqrt on the EUP; eps^2 clamp == max(||z||, eps) (sqrt monotone).
        inv_s = lax.rsqrt(jnp.maximum(jnp.sum(z_s * z_s, -1, keepdims=True), eps * eps))
        inv_q = lax.rsqrt(jnp.maximum(jnp.sum(z_q * z_q, -1, keepdims=True), eps * eps))
        s_n = z_s * inv_s
        # Contract the embedding dim of both operands; the query-side 1/||z_q|| is a cheap
        # [Q,1] column scale on the small [Q,Kp] result.  (If MLIR ever shows a materialized
        # relayout of s_n at large D, transpose s_n once and use a plain [Q,D]x[D,Kp] dot.)
        sims = lax.dot_general(
            z_q, s_n,
            dimension_numbers=(((1,), (1,)), ((), ())),
            preferred_element_type=jnp.float32,
        ) * inv_q                                                    # [Qp, Kp]

        # Padded (fake) support columns must receive zero softmax mass.
        col = lax.broadcasted_iota(jnp.int32, sims.shape, 1)
        sims = jnp.where(col < K, sims, -1e30)

        # Softmax over the support axis (f32; denominator reciprocal on the EUP).
        m = jnp.max(sims, axis=-1, keepdims=True)
        e = jnp.exp(sims - m)
        attn = e * pl.reciprocal(jnp.sum(e, axis=-1, keepdims=True), approx=True)

        # One-hot support labels built in-kernel (exact); padded rows are already masked.
        cls = lax.broadcasted_iota(jnp.int32, (Kp, out_ref.shape[1]), 1)
        oh = (cls == sy_ref[...]).astype(jnp.float32)                # [Kp, Cp]

        # preds = attn @ one_hot(support_y); lane-dense [Qp, 128] store.
        out_ref[...] = jnp.dot(attn, oh, preferred_element_type=jnp.float32)


@functools.partial(jax.jit, static_argnums=(5,))
def matching_network_forward(support_x, support_y, query_x, w, b, num_classes):
    """Pads/casts (tiny, fused under jit), then a single pallas_call; slices the result."""
    K = support_x.shape[0]
    Q = query_x.shape[0]
    F = support_x.shape[1] * support_x.shape[2]
    D = w.shape[1]

    Kp = _round_up(K, SUB)
    Qp = _round_up(Q, SUB)
    Fp = _round_up(F, LANE)
    Dp = _round_up(D, LANE)
    Cp = _round_up(max(num_classes, LANE), LANE)      # lane-dense output width

    # Activations: reshape is free; one small fused pad+cast per array, no concat pass.
    xs = jnp.pad(support_x.reshape(K, F), ((0, Kp - K), (0, Fp - F))).astype(jnp.bfloat16)
    xq = jnp.pad(query_x.reshape(Q, F), ((0, Qp - Q), (0, Fp - F))).astype(jnp.bfloat16)

    # Encoder params, zero-padded (in training these would be stored pre-padded).
    w_p = jnp.pad(w, ((0, Fp - F), (0, Dp - D))).astype(jnp.bfloat16)
    b_p = jnp.pad(b.reshape(1, D).astype(jnp.float32), ((0, 0), (0, Dp - D)))

    # Labels as a tiny int32 column vector (one-hot is built in-kernel).
    sy = jnp.pad(support_y.astype(jnp.int32), (0, Kp - K)).reshape(Kp, 1)

    # F-reduction tile: largest 128-multiple dividing Fp whose double-buffered weight
    # tile stays well inside the v5e 16 MiB scoped-VMEM budget.
    TF = LANE
    for cand in (1024, 512, 256, 128):
        if Fp % cand == 0 and 2 * cand * Dp * 2 <= 8 * 1024 * 1024:
            TF = cand
            break
    nf = Fp // TF

    vmem_limit = int(
        2 * ((Kp + Qp) * TF * 2 + TF * Dp * 2)     # double-buffered bf16 activation+weight tiles
        + 2 * (Dp * 4 + Kp * 4)                    # bias + labels
        + (Kp + Qp) * Dp * 4                       # f32 accumulator scratch
        + 2 * Qp * Cp * 4                          # output block
        + (2 << 20)                                # compiler slack
    )
    vmem_limit = max(vmem_limit, 16 * 1024 * 1024)

    cost = pl.CostEstimate(
        flops=2 * (Kp + Qp) * Fp * Dp + 2 * Qp * Dp * Kp + 2 * Qp * Kp * Cp,
        transcendentals=Qp * Kp + (Kp + Qp) + Qp,
        bytes_accessed=(Kp + Qp) * Fp * 2 + Fp * Dp * 2 + Dp * 4 + Kp * 4 + Qp * Cp * 4,
    )

    out = pl.pallas_call(
        functools.partial(matching_kernel, K=K, Kp=Kp),
        out_shape=jax.ShapeDtypeStruct((Qp, Cp), jnp.float32),
        grid=(nf,),
        in_specs=[
            pl.BlockSpec((Kp, TF), lambda f: (0, f)),
            pl.BlockSpec((Qp, TF), lambda f: (0, f)),
            pl.BlockSpec((TF, Dp), lambda f: (f, 0)),
            pl.BlockSpec((1, Dp), lambda f: (0, 0)),
            pl.BlockSpec((Kp, 1), lambda f: (0, 0)),
        ],
        out_specs=pl.BlockSpec((Qp, Cp), lambda f: (0, 0)),
        scratch_shapes=[pltpu.VMEM((Kp + Qp, Dp), jnp.float32)],
        compiler_params=pltpu.CompilerParams(
            dimension_semantics=("arbitrary",),     # F is a reduction axis
            vmem_limit_bytes=vmem_limit,
        ),
        cost_estimate=cost,
    )(xs, xq, w_p, b_p, sy)
    return out[:Q, :num_classes]


def reference_forward(support_x, support_y, query_x, w, b, num_classes):
    """Pure-JAX reference mirroring the PyTorch semantics."""
    K = support_x.shape[0]
    Q = query_x.shape[0]
    F = support_x.shape[1] * support_x.shape[2]
    z_s = jnp.maximum(support_x.reshape(K, F) @ w + b, 0.0)
    z_q = jnp.maximum(query_x.reshape(Q, F) @ w + b, 0.0)
    eps = 1e-8
    q_n = z_q / jnp.maximum(jnp.linalg.norm(z_q, axis=-1, keepdims=True), eps)
    s_n = z_s / jnp.maximum(jnp.linalg.norm(z_s, axis=-1, keepdims=True), eps)
    sims = q_n @ s_n.T
    attn = jax.nn.softmax(sims, axis=-1)
    one_hot = jax.nn.one_hot(support_y, num_classes, dtype=jnp.float32)
    return attn @ one_hot


if __name__ == "__main__":
    # Small few-shot episode: 4-way, 2-shot, 2-query, C=4 EEG channels, T=32 steps.
    num_classes = 4
    K_shot, Q_query = 2, 2
    K = num_classes * K_shot        # 8 support samples
    Q = num_classes * Q_query       # 8 query samples
    C, T = 4, 32
    embedding_dim = 32
    F = C * T

    key = jax.random.PRNGKey(0)
    k1, k2, k3, k4 = jax.random.split(key, 4)

    support_x = jax.random.normal(k1, (K, C, T), dtype=jnp.float32)
    query_x = jax.random.normal(k2, (Q, C, T), dtype=jnp.float32)
    support_y = jnp.tile(jnp.arange(num_classes, dtype=jnp.int32), K_shot)  # [K]

    # Deterministic encoder params (Linear C*T -> embedding_dim).
    w = jax.random.normal(k3, (F, embedding_dim), dtype=jnp.float32) * (1.0 / jnp.sqrt(F))
    b = jax.random.normal(k4, (embedding_dim,), dtype=jnp.float32) * 0.01

    preds = matching_network_forward(support_x, support_y, query_x, w, b, num_classes)
    preds = jax.block_until_ready(preds)
    assert preds.shape == (Q, num_classes)

    # Tight check against a reference that uses the same bf16-rounded MXU operands.
    bf = lambda a: a.astype(jnp.bfloat16).astype(jnp.float32)
    ref_bf16 = reference_forward(bf(support_x), support_y, bf(query_x), bf(w), b, num_classes)
    assert jnp.allclose(preds, ref_bf16, atol=5e-3, rtol=5e-3), "mismatch vs bf16-matched reference"

    # Loose check against the full-f32 reference (bf16 MXU inputs => relaxed tolerance).
    ref_f32 = reference_forward(support_x, support_y, query_x, w, b, num_classes)
    assert jnp.allclose(preds, ref_f32, atol=3e-2, rtol=3e-2), "mismatch vs f32 reference"

    # Softmax is computed in f32; rows must (approximately) sum to 1 despite approx reciprocal.
    assert jnp.allclose(jnp.sum(preds, axis=-1), 1.0, atol=5e-3), "rows must sum to 1"

    print("KERNEL_OK")
</pallas_src>

<mosaic_0001>
module attributes {stable_mosaic.version = 11 : i64} {
  func.func @matching_kernel(%arg0: i32, %arg1: memref<16x128xbf16, #tpu.memory_space<vmem>>, %arg2: memref<16x128xbf16, #tpu.memory_space<vmem>>, %arg3: memref<128x128xbf16, #tpu.memory_space<vmem>>, %arg4: memref<1x128xf32, #tpu.memory_space<vmem>>, %arg5: memref<16x1xi32, #tpu.memory_space<vmem>>, %arg6: memref<16x128xf32, #tpu.memory_space<vmem>>, %arg7: memref<32x128xf32, #tpu.memory_space<vmem>>) attributes {dimension_semantics = [#tpu.dimension_semantics<arbitrary>], iteration_bounds = array<i64: 1>, scalar_prefetch = 0 : i64, scratch_operands = 1 : i64, tpu.core_type = #tpu.core_type<tc>, window_params = [{transform_indices = @transform_0, window_bounds = array<i64: 16, 128>}, {transform_indices = @transform_1, window_bounds = array<i64: 16, 128>}, {transform_indices = @transform_2, window_bounds = array<i64: 128, 128>}, {pipeline_mode = #tpu.pipeline_mode<synchronous>, transform_indices = @transform_3, window_bounds = array<i64: 1, 128>}, {pipeline_mode = #tpu.pipeline_mode<synchronous>, transform_indices = @transform_4, window_bounds = array<i64: 16, 1>}, {pipeline_mode = #tpu.pipeline_mode<synchronous>, transform_indices = @transform_5, window_bounds = array<i64: 16, 128>}]} {
    %c0_i32 = arith.constant 0 : i32
    %0 = arith.cmpi eq, %arg0, %c0_i32 : i32
    %1 = arith.extui %0 : i1 to i32
    %c0_i32_0 = arith.constant 0 : i32
    %2 = arith.cmpi ne, %1, %c0_i32_0 : i32
    scf.if %2 {
      %cst_12 = arith.constant 0.000000e+00 : f32
      %14 = vector.broadcast %cst_12 : f32 to vector<32x128xf32>
      %c0_13 = arith.constant 0 : index
      %c0_14 = arith.constant 0 : index
      %15 = vector.load %arg7[%c0_13, %c0_14] : memref<32x128xf32, #tpu.memory_space<vmem>>, vector<32x128xf32>
      tpu.vector_store %arg7[%c0_13, %c0_14], %14 {strides = array<i32>} : memref<32x128xf32, #tpu.memory_space<vmem>>, vector<32x128xf32>,
    } else {
    }
    %c0 = arith.constant 0 : index
    %c0_1 = arith.constant 0 : index
    %3 = vector.load %arg1[%c0, %c0_1] : memref<16x128xbf16, #tpu.memory_space<vmem>>, vector<16x128xbf16>
    %c0_2 = arith.constant 0 : index
    %c0_3 = arith.constant 0 : index
    %4 = vector.load %arg2[%c0_2, %c0_3] : memref<16x128xbf16, #tpu.memory_space<vmem>>, vector<16x128xbf16>
    %5 = tpu.concatenate %3, %4 in 0 : vector<16x128xbf16>, vector<16x128xbf16> -> vector<32x128xbf16>
    %c0_4 = arith.constant 0 : index
    %c0_5 = arith.constant 0 : index
    %6 = vector.load %arg7[%c0_4, %c0_5] : memref<32x128xf32, #tpu.memory_space<vmem>>, vector<32x128xf32>
    %c0_6 = arith.constant 0 : index
    %c0_7 = arith.constant 0 : index
    %7 = vector.load %arg3[%c0_6, %c0_7] : memref<128x128xbf16, #tpu.memory_space<vmem>>, vector<128x128xbf16>
    %cst = arith.constant dense<0.000000e+00> : vector<32x128xf32>
    %8 = tpu.matmul %5, %7, %cst {dimension_numbers = #tpu.dot_dimension_numbers<[1], [0], [0], [1], [0, 0, 1, 1], [], []>} : vector<32x128xbf16>, vector<128x128xbf16>, vector<32x128xf32> -> vector<32x128xf32>
    %9 = arith.addf %6, %8 : vector<32x128xf32>
    %c0_8 = arith.constant 0 : index
    %c0_9 = arith.constant 0 : index
    %10 = vector.load %arg7[%c0_8, %c0_9] : memref<32x128xf32, #tpu.memory_space<vmem>>, vector<32x128xf32>
    tpu.vector_store %arg7[%c0_8, %c0_9], %9 {strides = array<i32>} : memref<32x128xf32, #tpu.memory_space<vmem>>, vector<32x128xf32>,
    %c0_i32_10 = arith.constant 0 : i32
    %11 = arith.cmpi eq, %arg0, %c0_i32_10 : i32
    %12 = arith.extui %11 : i1 to i32
    %c0_i32_11 = arith.constant 0 : i32
    %13 = arith.cmpi ne, %12, %c0_i32_11 : i32
    scf.if %13 {
      %c0_12 = arith.constant 0 : index
      %c0_13 = arith.constant 0 : index
      %14 = vector.load %arg7[%c0_12, %c0_13] : memref<32x128xf32, #tpu.memory_space<vmem>>, vector<32x128xf32>
      %c0_14 = arith.constant 0 : index
      %c0_15 = arith.constant 0 : index
      %15 = vector.load %arg4[%c0_14, %c0_15] : memref<1x128xf32, #tpu.memory_space<vmem>>, vector<1x128xf32>
      %16 = vector.broadcast %15 : vector<1x128xf32> to vector<32x128xf32>
      %17 = arith.addf %14, %16 : vector<32x128xf32>
      %cst_16 = arith.constant 0.000000e+00 : f32
      %18 = vector.broadcast %cst_16 : f32 to vector<32x128xf32>
      %19 = arith.maximumf %17, %18 : vector<32x128xf32>
      %20 = vector.extract_strided_slice %19 {offsets = [0, 0], sizes = [16, 128], strides = [1, 1]} : vector<32x128xf32> to vector<16x128xf32>
      %21 = vector.extract_strided_slice %19 {offsets = [16, 0], sizes = [16, 128], strides = [1, 1]} : vector<32x128xf32> to vector<16x128xf32>
      %22 = arith.mulf %20, %20 : vector<16x128xf32>
      %cst_17 = arith.constant dense<0.000000e+00> : vector<16xf32>
      %23 = vector.multi_reduction <add>, %22, %cst_17 [1] : vector<16x128xf32> to vector<16xf32>
      %24 = vector.shape_cast %23 : vector<16xf32> to vector<16x1xf32>
      %cst_18 = arith.constant 1.000000e-16 : f32
      %25 = vector.broadcast %cst_18 : f32 to vector<16x1xf32>
      %26 = arith.maximumf %24, %25 : vector<16x1xf32>
      %27 = math.rsqrt %26 : vector<16x1xf32>
      %28 = arith.mulf %21, %21 : vector<16x128xf32>
      %cst_19 = arith.constant dense<0.000000e+00> : vector<16xf32>
      %29 = vector.multi_reduction <add>, %28, %cst_19 [1] : vector<16x128xf32> to vector<16xf32>
      %30 = vector.shape_cast %29 : vector<16xf32> to vector<16x1xf32>
      %cst_20 = arith.constant 1.000000e-16 : f32
      %31 = vector.broadcast %cst_20 : f32 to vector<16x1xf32>
      %32 = arith.maximumf %30, %31 : vector<16x1xf32>
      %33 = math.rsqrt %32 : vector<16x1xf32>
      %34 = vector.broadcast %27 : vector<16x1xf32> to vector<16x128xf32>
      %35 = arith.mulf %20, %34 : vector<16x128xf32>
      %cst_21 = arith.constant dense<0.000000e+00> : vector<16x16xf32>
      %36 = tpu.matmul %21, %35, %cst_21 {dimension_numbers = #tpu.dot_dimension_numbers<[1], [1], [0], [0], [0, 0, 1, 0], [], []>} : vector<16x128xf32>, vector<16x128xf32>, vector<16x16xf32> -> vector<16x16xf32>
      %37 = vector.broadcast %33 : vector<16x1xf32> to vector<16x16xf32>
      %38 = arith.mulf %36, %37 : vector<16x16xf32>
      %39 = tpu.iota {dimensions = array<i32: 1>} : vector<16x16xi32>
      %c8_i32 = arith.constant 8 : i32
      %40 = vector.broadcast %c8_i32 : i32 to vector<16x16xi32>
      %41 = arith.cmpi slt, %39, %40 : vector<16x16xi32>
      %cst_22 = arith.constant -1.000000e+30 : f32
      %42 = vector.broadcast %cst_22 : f32 to vector<16x16xf32>
      %43 = arith.select %41, %38, %42 : vector<16x16xi1>, vector<16x16xf32>
      %cst_23 = arith.constant dense<0xFF800000> : vector<16xf32>
      %44 = vector.multi_reduction <maximumf>, %43, %cst_23 [1] : vector<16x16xf32> to vector<16xf32>
      %45 = vector.shape_cast %44 : vector<16xf32> to vector<16x1xf32>
      %46 = vector.broadcast %45 : vector<16x1xf32> to vector<16x16xf32>
      %47 = arith.subf %43, %46 : vector<16x16xf32>
      %48 = math.exp %47 : vector<16x16xf32>
      %cst_24 = arith.constant dense<0.000000e+00> : vector<16xf32>
      %49 = vector.multi_reduction <add>, %48, %cst_24 [1] : vector<16x16xf32> to vector<16xf32>
      %50 = vector.shape_cast %49 : vector<16xf32> to vector<16x1xf32>
      %51 = tpu.reciprocal %50 {approx = true} : vector<16x1xf32> -> vector<16x1xf32>
      %52 = vector.broadcast %51 : vector<16x1xf32> to vector<16x16xf32>
      %53 = arith.mulf %48, %52 : vector<16x16xf32>
      %54 = tpu.iota {dimensions = array<i32: 1>} : vector<16x128xi32>
      %c0_25 = arith.constant 0 : index
      %c0_26 = arith.constant 0 : index
      %55 = vector.load %arg5[%c0_25, %c0_26] : memref<16x1xi32, #tpu.memory_space<vmem>>, vector<16x1xi32>
      %56 = vector.broadcast %55 : vector<16x1xi32> to vector<16x128xi32>
      %57 = arith.cmpi eq, %54, %56 : vector<16x128xi32>
      %58 = arith.extui %57 : vector<16x128xi1> to vector<16x128xi32>
      %59 = arith.sitofp %58 : vector<16x128xi32> to vector<16x128xf32>
      %cst_27 = arith.constant dense<0.000000e+00> : vector<16x128xf32>
      %60 = tpu.matmul %53, %59, %cst_27 {dimension_numbers = #tpu.dot_dimension_numbers<[1], [0], [0], [1], [0, 0, 1, 1], [], []>} : vector<16x16xf32>, vector<16x128xf32>, vector<16x128xf32> -> vector<16x128xf32>
      %c0_28 = arith.constant 0 : index
      %c0_29 = arith.constant 0 : index
      %61 = vector.load %arg6[%c0_28, %c0_29] : memref<16x128xf32, #tpu.memory_space<vmem>>, vector<16x128xf32>
      tpu.vector_store %arg6[%c0_28, %c0_29], %60 {strides = array<i32>} : memref<16x128xf32, #tpu.memory_space<vmem>>, vector<16x128xf32>,
    } else {
    }
    return
  }
  func.func @transform_0(%arg0: i32) -> (i32, i32) {
    %c0_i32 = arith.constant 0 : i32
    %c0_i32_0 = arith.constant 0 : i32
    return %c0_i32, %arg0 : i32, i32
  }
  func.func @transform_1(%arg0: i32) -> (i32, i32) {
    %c0_i32 = arith.constant 0 : i32
    %c0_i32_0 = arith.constant 0 : i32
    return %c0_i32, %arg0 : i32, i32
  }
  func.func @transform_2(%arg0: i32) -> (i32, i32) {
    %c0_i32 = arith.constant 0 : i32
    %c0_i32_0 = arith.constant 0 : i32
    return %arg0, %c0_i32 : i32, i32
  }
  func.func @transform_3(%arg0: i32) -> (i32, i32) {
    %c0_i32 = arith.constant 0 : i32
    %c0_i32_0 = arith.constant 0 : i32
    %c0_i32_1 = arith.constant 0 : i32
    return %c0_i32, %c0_i32_0 : i32, i32
  }
  func.func @transform_4(%arg0: i32) -> (i32, i32) {
    %c0_i32 = arith.constant 0 : i32
    %c0_i32_0 = arith.constant 0 : i32
    %c0_i32_1 = arith.constant 0 : i32
    return %c0_i32, %c0_i32_0 : i32, i32
  }
  func.func @transform_5(%arg0: i32) -> (i32, i32) {
    %c0_i32 = arith.constant 0 : i32
    %c0_i32_0 = arith.constant 0 : i32
    %c0_i32_1 = arith.constant 0 : i32
    return %c0_i32, %c0_i32_0 : i32, i32
  }
}

</mosaic_0001>

<bundles_post_ra>
// kernel: matching_network_forward.1
= control target key start
LH: loop header
LB: loop body
LE: loop exit
PB: predicated region body
PF: predicated region fallthrough
CT: control target
= control target key end

     0   :  { %v291_v40 = vlaneseq  ;;  %vm296_vm1 = vcmask 130048   ;;  %v527_v52 = vmov 0   ;;  %s610_s2 = inlined_call_operand.vmem [shape: bf16[128,128], index: 2, kind: input, shape index: {}]   ;;  %s611_s0 = inlined_call_operand.vmem [shape: bf16[16,128], index: 0, kind: input, shape index: {}]   ;;  %s612_s1 = inlined_call_operand.vmem [shape: bf16[16,128], index: 1, kind: input, shape index: {}]   ;;  %s613_s3 = inlined_call_operand.vmem [shape: f32[1,128], index: 3, kind: input, shape index: {}]   ;;  %s614_s4 = inlined_call_operand.vmem [shape: s32[16,1], index: 4, kind: input, shape index: {}]   ;;  %s615_s5 = inlined_call_operand.vmem [shape: f32[16,128], index: 5, kind: output, shape index: {}]  }
   0x1   :  { %v501_v0 = vld [vmem:[%s610_s2] sm:$0xff]   ;;  %v502_v1 = vld [vmem:[%s610_s2 + $0x8] sm:$0xff]   ;;  %v503_v2 = vld [vmem:[%s610_s2 + $0x10] sm:$0xff]   ;;  %500 = vset.pattern.permute.xlu1 %v527_v52  ;;  %499 = vset.pattern.permute.xlu0 %v527_v52 }
   0x2   :  { %455 = vmatprep.subr.bf16.mxu0 %v501_v0  ;;  %v504_v3 = vld [vmem:[%s610_s2 + $0x18] sm:$0xff]   ;;  %v509_v4 = vld [vmem:[%s611_s0] sm:$0xff]   ;;  %v506_v6 = vld [vmem:[%s610_s2 + $0x28] sm:$0xff]   ;;  %v292_v41 = vand.u32 127, %v291_v40 }
   0x3   :  { %456 = vmatpush3.bf16.msra.mxu0 %v501_v0  ;;  %471 = vmatprep.mubr.bf16.mxu0 %v509_v4  ;;  %v505_v5 = vld [vmem:[%s610_s2 + $0x20] sm:$0xff]   ;;  %v507_v7 = vld [vmem:[%s610_s2 + $0x30] sm:$0xff]   ;;  %v508_v8 = vld [vmem:[%s610_s2 + $0x38] sm:$0xff]  }
   0x4   :  { %457 = vmatprep.subr.bf16.mxu0 %v502_v1  ;;  %v510_v9 = vld [vmem:[%s612_s1] sm:$0xff]   ;;  %vm293_vm0 = vcmp.lt.s32.totalorder %v292_v41, 8  ;;  %v320_v63 = vld [vmem:[%s614_s4 + $0x8] sm:$0xff] }
   0x5   :  { %v430_v10 = vld [vmem:[%s613_s3] ss:$0 sm:$0xff] }
   0x6   :  { %v319_v0 = vld [vmem:[%s614_s4] sm:$0xff] }
   0x7   :  { %458 = vmatpush3.bf16.msra.mxu0 %v502_v1 }
   0x8   :  { %459 = vmatprep.subr.bf16.mxu0 %v503_v2 }
   0xb   :  { %460 = vmatpush3.bf16.msra.mxu0 %v503_v2 }
   0xc   :  { %461 = vmatprep.subr.bf16.mxu0 %v504_v3 }
   0xf   :  { %462 = vmatpush3.bf16.msra.mxu0 %v504_v3 }
  0x10   :  { %463 = vmatprep.subr.bf16.mxu0 %v505_v5 }
  0x13   :  { %464 = vmatpush3.bf16.msra.mxu0 %v505_v5 }
  0x14   :  { %465 = vmatprep.subr.bf16.mxu0 %v506_v6 }
  0x17   :  { %466 = vmatpush3.bf16.msra.mxu0 %v506_v6 }
  0x18   :  { %467 = vmatprep.subr.bf16.mxu0 %v507_v7 }
  0x1b   :  { %468 = vmatpush3.bf16.msra.mxu0 %v507_v7  ;;  %v528_v7 = vmov 1.0|1.0  }
  0x1c   :  { %469 = vmatprep.subr.bf16.mxu0 %v508_v8 }
  0x1f   :  { %470 = vmatpush3.bf16.msra.mxu0 %v508_v8 }
  0x22   :  { %472 = vmatmul.mubr.bf16.vlgmr.msra.gmra.mrb[0].mxu0 %v510_v9 }
  0xf5   :  { %v473_v11 = vpop.f32.mrb[0].mxu0 }
  0xf6   :  { %v186_v12 = vadd.f32 %v473_v11, %v430_v10  ;;  %v147_v13 = vpop.f32.mrb[1].mxu0 }
  0xf7   :  { %v184_v14 = vadd.f32 %v430_v10, %v147_v13  ;;  %v474_v15 = vpop.f32.mrb[2].mxu0 }
  0xf8   :  { %v190_v16 = vmax.f32 %v186_v12, 0.0  ;;  %v187_v17 = vadd.f32 %v474_v15, %v430_v10  ;;  %v150_v18 = vpop.f32.mrb[3].mxu0 }
  0xf9   :  { %v188_v19 = vmax.f32 %v184_v14, 0.0  ;;  %v185_v20 = vadd.f32 %v430_v10, %v150_v18 }
  0xfa   :  { %v191_v21 = vmax.f32 %v187_v17, 0.0  ;;  %479 = vmatprep.mubr.f32.mxu1 %v190_v16  ;;  %v202_v22 = vmul.f32 %v190_v16, %v190_v16 }
  0xfb   :  { %v189_v23 = vmax.f32 %v185_v20, 0.0  ;;  %v192_v24 = vmul.f32 %v188_v19, %v188_v19 }
  0xfc   :  { %204 = vadd.xlane.f32.xlu1 %v202_v22  ;;  %v203_v25 = vmul.f32 %v191_v21, %v191_v21 }
  0xfd   :  { %194 = vadd.xlane.f32.xlu0 %v192_v24  ;;  %v193_v26 = vmul.f32 %v189_v23, %v189_v23 }
 0x100   :  { %206 = vadd.xlane.f32.xlu1 %v203_v25 }
 0x101   :  { %196 = vadd.xlane.f32.xlu0 %v193_v26 }
 0x189   :  { %v205_v36 = vpop.xlane.xlu1 %204 }
 0x18a   :  { %v195_v27 = vpop.xlane.xlu0 %194  ;;  %v208_v39 = vmax.f32 %v205_v36, 1e-16 }
 0x18b   :  { %v198_v28 = vmax.f32 %v195_v27, 1e-16 }
 0x18d   :  { %511 = vrsqrt.f32 %v198_v28  ;;  %v207_v37 = vpop.xlane.xlu1 %206 }
 0x18e   :  { %v197_v29 = vpop.xlane.xlu0 %196  ;;  %v209_v38 = vmax.f32 %v207_v37, 1e-16 }
 0x18f   :  { %v199_v30 = vmax.f32 %v197_v29, 1e-16 }
 0x191   :  { %513 = vrsqrt.f32 %v199_v30 }
 0x192   :  { %515 = vrsqrt.f32 %v209_v38 }
 0x193   :  { %517 = vrsqrt.f32 %v208_v39 }
 0x197   :  { %v512_v31 = vpop.eup %511 }
 0x198   :  { %v212_v33 = vmul.f32 %v512_v31, %v188_v19 }
 0x19b   :  { %v514_v32 = vpop.eup %513 }
 0x19c   :  { %v213_v34 = vmul.f32 %v514_v32, %v189_v23  ;;  %v516_v42 = vpop.eup %515 }
 0x19d   :  { %v518_v44 = vpop.eup %517 }
 0x19e   :  { %v489_v35 = vpack.c.bf16 %v213_v34, %v212_v33 }
 0x1a0   :  { %490 = vmatprep.subr.bf16.mxu1 %v489_v35 }
 0x1a1   :  { %492 = vmatpush3.bf16.xpose.msra.mxu1 %v489_v35 }
 0x1a8   :  { %480 = vmatmul.mubr.f32.vlgmr.msra.gmra.mrb[0].mxu1 %v191_v21 }
 0x27b   :  { %v481_v43 = vpop.f32.mrb[0].mxu1 }
 0x27c   :  { %v290_v45 = vmul.f32 %v516_v42, %v481_v43  ;;  %v280_v46 = vpop.f32.mrb[1].mxu1 }
 0x27d   :  { %v289_v47 = vmul.f32 %v518_v44, %v280_v46 }
 0x27e   :  { %v295_v48 = vsel %vm293_vm0, %v290_v45, -1e+30 }
 0x27f   :  { %v300_v49 = vsel %vm296_vm1, %v295_v48, -inf  ;;  %v294_v50 = vsel %vm293_vm0, %v289_v47, -1e+30 }
 0x280   :  { %301 = vmax.xlane.f32.xlu1 %v300_v49  ;;  %v297_v51 = vsel %vm296_vm1, %v294_v50, -inf }
 0x281   :  { %298 = vmax.xlane.f32.xlu0 %v297_v51 }
 0x30d   :  { %v302_v53 = vpop.xlane.xlu1 %301 }
 0x30e   :  { %v304_v54 = vsub.f32 %v295_v48, %v302_v53  ;;  %v299_v55 = vpop.xlane.xlu0 %298 }
 0x30f   :  { %v303_v56 = vsub.f32 %v294_v50, %v299_v55 }
 0x310   :  { %v307_v57 = vmul.f32 1.442695, %v304_v54 }
 0x311   :  { %v305_v58 = vmul.f32 1.442695, %v303_v56 }
 0x312   :  { %519 = vpow2.f32 %v307_v57 }
 0x313   :  { %521 = vpow2.f32 %v305_v58 }
 0x31c   :  { %v520_v59 = vpop.eup %519 }
 0x31d   :  { %v522_v60 = vpop.eup %521  ;;  %v312_v61 = vsel %vm296_vm1, %v520_v59, 0.0 }
 0x31e   :  { %313 = vadd.xlane.f32.xlu1 %v312_v61  ;;  %v309_v62 = vsel %vm296_vm1, %v522_v60, 0.0 }
 0x31f   :  { %310 = vadd.xlane.f32.xlu0 %v309_v62 }
 0x32f   :  { %325 = vperm.xlu1 %500, %v320_v63  }
 0x335   :  { %322 = vperm.xlu0 %499, %v319_v0  }
 0x3ab   :  { %v314_v1 = vpop.xlane.xlu1 %313 }
 0x3ac   :  { %523 = vrcp.f32 %v314_v1  ;;  %v311_v2 = vpop.xlane.xlu0 %310 }
 0x3ad   :  { %525 = vrcp.f32 %v311_v2 }
 0x3af   :  { %v326_v3 = vpop.permute.xlu1 %325 }
 0x3b0   :  { %vm328_vm2 = vcmp.eq.s32.totalorder %v292_v41, %v326_v3 }
 0x3b4   :  { %v323_v4 = vpop.permute.xlu0 %322 }
 0x3b5   :  { %vm327_vm3 = vcmp.eq.s32.totalorder %v292_v41, %v323_v4 }
 0x3b6   :  { %v524_v5 = vpop.eup %523  ;;  %vm493_vm4 = vmpackc.low %vm328_vm2, %vm327_vm3 }
 0x3b7   :  { %v526_v6 = vpop.eup %525  ;;  %494 = vmatprep.subr.msk.bf16.mxu1 %vm493_vm4, %v528_v7  ;;  %v318_v9 = vmul.f32 %v524_v5, %v520_v59 }
 0x3b8   :  { %496 = vmatpush3.bf16.msk.msra.mxu1 %vm493_vm4, %v528_v7  ;;  %v317_v8 = vmul.f32 %v526_v6, %v522_v60 }
 0x3ba   :  { %486 = vmatprep.mubr.msk.f32.mxu1 %vm296_vm1, %v317_v8 }
 0x3bb   :  { %487 = vmatmul.mubr.msk.f32.vlgmr.msra.gmra.mrb[2].mxu1 %vm296_vm1, %v318_v9 }
 0x48e   :  { %v488_v10 = vpop.f32.mrb[2].mxu1 }
 0x48f   :  { %415 = vst [vmem:[%s615_s5 + $0x8] sm:$0xff] %v488_v10  ;;  %v405_v11 = vpop.f32.mrb[3].mxu1 }
 0x490   :  { %414 = vst [vmem:[%s615_s5] sm:$0xff] %v405_v11 }

</bundles_post_ra>
